<compile_context>
chip_gen: v7x
topology: tpu7x:2x2x1
jax: 0.10.0
libtpu: 0.0.40
codegen_flags: <defaults>
</compile_context>

<pallas_src>
import functools

import jax
import jax.numpy as jnp
from jax import lax
from jax.experimental import pallas as pl
from jax.experimental.pallas import tpu as pltpu


def _round_up(x, m):
    return (x + m - 1) // m * m


def _conv1d_same_kernel(*refs, kr, tl):
    """One (batch, length-tile) grid step; lane-dense NCL output tile.

    refs (kr > 1): x_ref   (1, cr, tl)    current interleaved input tile
                   xh_ref  (1, cr, 128)   128-aligned halo block (next tile)
                   w_ref   (c_out, kr*cr) tap-folded dense weights
                   b_ref   (c_out, 1)
                   o_ref   (1, c_out, tl) output tile (length on lanes)
    refs (kr == 1): same without xh_ref.
    """
    if kr > 1:
        x_ref, xh_ref, w_ref, b_ref, o_ref = refs
    else:
        x_ref, w_ref, b_ref, o_ref = refs

    cur = x_ref[0]                                            # (cr, tl)
    if kr > 1:
        # Both pieces are 128-aligned in lanes -> layout-trivial concat.
        wide = jnp.concatenate([cur, xh_ref[0]], axis=-1)     # (cr, tl + 128)
        # Stack the kr stride-phase shifted windows along sublanes so the
        # whole conv tap set becomes a single MXU contraction of width kr*cr.
        rhs = jnp.concatenate([wide[:, q:q + tl] for q in range(kr)], axis=0)
    else:
        rhs = cur                                             # (cr, tl)

    acc = jnp.dot(w_ref[...], rhs, preferred_element_type=jnp.float32)
    o_ref[0] = (acc + b_ref[...]).astype(o_ref.dtype)


def _pick_length_tile(l_out, c_out):
    """Lane tile: multiple of 128; bound only the f32 accumulator (~128 KiB)."""
    tl = 2048
    while tl > 256 and c_out * tl * 4 > 128 * 1024:
        tl //= 2
    return min(tl, _round_up(max(l_out, 1), 128))


def conv1d_pad_same(x, w, b, *, stride, groups=1, tile_len=None,
                    compute_dtype=None):
    """x: (N, C_in, L), w: (C_out, C_in//groups, K), b: (C_out,).

    Returns (N, C_out, L_out); same semantics as MyConv1dPadSame.forward.
    """
    n, c_in, L = x.shape
    c_out, cin_g, K = w.shape
    assert c_in % groups == 0 and c_out % groups == 0 and cin_g == c_in // groups
    co_g = c_out // groups

    # --- SAME-padding arithmetic (exactly as in the PyTorch module) ---
    out_dim = (L + stride - 1) // stride
    p = max(0, (out_dim - 1) * stride + K - L)
    pad_left = p // 2
    l_out = (L + p - K) // stride + 1

    # Optional low-precision compute path (accumulation stays f32).
    if compute_dtype is not None:
        x = x.astype(compute_dtype)
        w = w.astype(compute_dtype)

    # --- Fold stride + taps: kr = ceil(K/stride) phase groups, cr = C_in*stride.
    kr = (K - 1) // stride + 1
    assert kr <= 129, "taps per stride phase exceed the 128-column halo block"
    cr = c_in * stride

    tl = tile_len if tile_len is not None else _pick_length_tile(l_out, c_out)
    assert tl % 128 == 0
    n_tiles = pl.cdiv(l_out, tl)
    halo_cols = 128 if kr > 1 else 0
    lr = n_tiles * tl + halo_cols            # columns of the interleaved input
    l_total = lr * stride                    # zero-padded input length
    pad_right = l_total - L - pad_left
    assert pad_right >= 0

    # Interleave stride phases onto the channel (sublane) axis:
    #   xr[n, c*stride + s, col] = x_padded[n, c, col*stride + s]
    xp = jnp.pad(x, ((0, 0), (0, 0), (pad_left, pad_right)))
    xr = jnp.transpose(xp.reshape(n, c_in, lr, stride),
                       (0, 1, 3, 2)).reshape(n, cr, lr)

    # Dense (block-diagonal for groups>1) weight, tap-folded and flattened:
    #   w_flat[o, q*cr + c*stride + s] = W_dense[o, c, q*stride + s]  (0 for k>=K)
    if groups == 1:
        w_dense = w
    else:
        w_dense = jnp.zeros((c_out, c_in, K), w.dtype)
        for g in range(groups):
            w_dense = w_dense.at[g * co_g:(g + 1) * co_g,
                                 g * cin_g:(g + 1) * cin_g, :].set(
                w[g * co_g:(g + 1) * co_g])
    w_padk = jnp.pad(w_dense, ((0, 0), (0, 0), (0, kr * stride - K)))
    w_flat = jnp.transpose(w_padk.reshape(c_out, c_in, kr, stride),
                           (0, 2, 1, 3)).reshape(c_out, kr * cr)
    b2 = b.reshape(c_out, 1).astype(jnp.float32)

    # --- specs: stream (cr, tl) tiles + a 128-column halo block from ti+1 ---
    in_specs = [pl.BlockSpec((1, cr, tl), lambda bi, ti: (bi, 0, ti))]
    arrays = [xr]
    if kr > 1:
        blk = tl // 128
        in_specs.append(
            pl.BlockSpec((1, cr, 128), lambda bi, ti: (bi, 0, (ti + 1) * blk)))
        arrays.append(xr)
    in_specs += [
        pl.BlockSpec((c_out, kr * cr), lambda bi, ti: (0, 0)),
        pl.BlockSpec((c_out, 1), lambda bi, ti: (0, 0)),
    ]
    arrays += [w_flat, b2]

    # --- generation-aware VMEM budget (leave ~15% headroom for Mosaic) ---
    itemsize = x.dtype.itemsize
    try:
        vmem_cap = int(pltpu.get_tpu_info().vmem_capacity_bytes)
    except Exception:
        vmem_cap = 64 * 1024 * 1024          # conservative: v7x per-TC size
    per_step = (2 * cr * (tl + halo_cols) * itemsize        # x tiles (dbl-buf)
                + 2 * c_out * tl * itemsize                 # out tile (dbl-buf)
                + 2 * (c_out * kr * cr * itemsize + c_out * 4)  # weights + bias
                + (kr + 1) * cr * tl * 4)                   # rhs/wide spill room
    vmem_limit = int(min(int(vmem_cap * 0.85),
                         max(2 * per_step + (4 << 20), 32 * 1024 * 1024)))

    # Executed (dense, stride/group-folded) FLOPs and kernel-side HBM bytes.
    cost = pl.CostEstimate(
        flops=2 * n * n_tiles * tl * c_out * kr * cr,
        transcendentals=0,
        bytes_accessed=int(n * n_tiles * cr * (tl + halo_cols) * itemsize
                           + w_flat.size * itemsize + c_out * 4
                           + n * c_out * l_out * itemsize),
    )

    return pl.pallas_call(
        functools.partial(_conv1d_same_kernel, kr=kr, tl=tl),
        out_shape=jax.ShapeDtypeStruct((n, c_out, l_out), x.dtype),
        grid=(n, n_tiles),
        in_specs=in_specs,
        out_specs=pl.BlockSpec((1, c_out, tl), lambda bi, ti: (bi, 0, ti)),
        compiler_params=pltpu.CompilerParams(
            # TODO(synk): on v7x verify megacore shards the n_tiles axis when N==1.
            dimension_semantics=("parallel", "parallel"),
            vmem_limit_bytes=vmem_limit,
        ),
        cost_estimate=cost,
    )(*arrays)


def _reference(x, w, b, stride, groups):
    L = x.shape[-1]
    K = w.shape[-1]
    out_dim = (L + stride - 1) // stride
    p = max(0, (out_dim - 1) * stride + K - L)
    y = lax.conv_general_dilated(
        x, w, window_strides=(stride,), padding=[(p // 2, p - p // 2)],
        dimension_numbers=("NCH", "OIH", "NCH"), feature_group_count=groups)
    return y + b[None, :, None]


if __name__ == "__main__":
    key = jax.random.PRNGKey(0)
    configs = [
        # (N, C_in, C_out, K, stride, groups, L, tile_len)
        (2, 4, 8, 3, 2, 1, 16, None),
        (2, 4, 8, 5, 3, 2, 19, None),
        (1, 6, 6, 7, 1, 1, 40, None),
        # multi-tile: exercises cross-tile halo streaming + ragged final tile
        (1, 4, 8, 7, 2, 1, 600, 128),
    ]
    for (N, C_IN, C_OUT, K, STRIDE, GROUPS, L, TL) in configs:
        key, kx, kw, kb = jax.random.split(key, 4)
        x = jax.random.normal(kx, (N, C_IN, L), jnp.float32)
        w = jax.random.normal(kw, (C_OUT, C_IN // GROUPS, K), jnp.float32) * 0.1
        b = jax.random.normal(kb, (C_OUT,), jnp.float32) * 0.1

        out = jax.block_until_ready(
            conv1d_pad_same(x, w, b, stride=STRIDE, groups=GROUPS, tile_len=TL))
        ref = _reference(x, w, b, STRIDE, GROUPS)
        assert out.shape == ref.shape, (out.shape, ref.shape)
        assert jnp.allclose(out, ref, atol=3e-2, rtol=3e-2), \
            float(jnp.abs(out - ref).max())

    print("KERNEL_OK")
</pallas_src>

<mosaic_0001>
module attributes {stable_mosaic.version = 11 : i64} {
  func.func @_conv1d_same_kernel(%arg0: i32, %arg1: i32, %arg2: memref<1x8x128xf32, #tpu.memory_space<vmem>>, %arg3: memref<1x8x128xf32, #tpu.memory_space<vmem>>, %arg4: memref<8x16xf32, #tpu.memory_space<vmem>>, %arg5: memref<8x1xf32, #tpu.memory_space<vmem>>, %arg6: memref<1x8x128xf32, #tpu.memory_space<vmem>>) attributes {dimension_semantics = [#tpu.dimension_semantics<parallel>, #tpu.dimension_semantics<parallel>], iteration_bounds = array<i64: 2, 1>, scalar_prefetch = 0 : i64, scratch_operands = 0 : i64, tpu.core_type = #tpu.core_type<tc>, window_params = [{transform_indices = @transform_0, window_bounds = array<i64: 1, 8, 128>}, {transform_indices = @transform_1, window_bounds = array<i64: 1, 8, 128>}, {pipeline_mode = #tpu.pipeline_mode<synchronous>, transform_indices = @transform_2, window_bounds = array<i64: 8, 16>}, {pipeline_mode = #tpu.pipeline_mode<synchronous>, transform_indices = @transform_3, window_bounds = array<i64: 8, 1>}, {transform_indices = @transform_4, window_bounds = array<i64: 1, 8, 128>}]} {
    %c0 = arith.constant 0 : index
    %c0_0 = arith.constant 0 : index
    %c0_1 = arith.constant 0 : index
    %0 = vector.load %arg2[%c0, %c0_0, %c0_1] : memref<1x8x128xf32, #tpu.memory_space<vmem>>, vector<1x8x128xf32>
    %1 = vector.shape_cast %0 : vector<1x8x128xf32> to vector<8x128xf32>
    %c0_2 = arith.constant 0 : index
    %c0_3 = arith.constant 0 : index
    %c0_4 = arith.constant 0 : index
    %2 = vector.load %arg3[%c0_2, %c0_3, %c0_4] : memref<1x8x128xf32, #tpu.memory_space<vmem>>, vector<1x8x128xf32>
    %3 = vector.shape_cast %2 : vector<1x8x128xf32> to vector<8x128xf32>
    %4 = tpu.concatenate %1, %3 in 1 : vector<8x128xf32>, vector<8x128xf32> -> vector<8x256xf32>
    %5 = vector.extract_strided_slice %4 {offsets = [0, 0], sizes = [8, 128], strides = [1, 1]} : vector<8x256xf32> to vector<8x128xf32>
    %6 = vector.extract_strided_slice %4 {offsets = [0, 1], sizes = [8, 128], strides = [1, 1]} : vector<8x256xf32> to vector<8x128xf32>
    %7 = tpu.concatenate %5, %6 in 0 : vector<8x128xf32>, vector<8x128xf32> -> vector<16x128xf32>
    %c0_5 = arith.constant 0 : index
    %c0_6 = arith.constant 0 : index
    %8 = vector.load %arg4[%c0_5, %c0_6] : memref<8x16xf32, #tpu.memory_space<vmem>>, vector<8x16xf32>
    %cst = arith.constant dense<0.000000e+00> : vector<8x128xf32>
    %9 = tpu.matmul %8, %7, %cst {dimension_numbers = #tpu.dot_dimension_numbers<[1], [0], [0], [1], [0, 0, 1, 1], [], []>} : vector<8x16xf32>, vector<16x128xf32>, vector<8x128xf32> -> vector<8x128xf32>
    %c0_7 = arith.constant 0 : index
    %c0_8 = arith.constant 0 : index
    %10 = vector.load %arg5[%c0_7, %c0_8] : memref<8x1xf32, #tpu.memory_space<vmem>>, vector<8x1xf32>
    %11 = vector.broadcast %10 : vector<8x1xf32> to vector<8x128xf32>
    %12 = arith.addf %9, %11 : vector<8x128xf32>
    %c0_9 = arith.constant 0 : index
    %c0_10 = arith.constant 0 : index
    %c0_11 = arith.constant 0 : index
    %13 = vector.load %arg6[%c0_9, %c0_10, %c0_11] : memref<1x8x128xf32, #tpu.memory_space<vmem>>, vector<1x8x128xf32>
    %14 = vector.shape_cast %13 : vector<1x8x128xf32> to vector<8x128xf32>
    %15 = vector.shape_cast %12 : vector<8x128xf32> to vector<1x8x128xf32>
    tpu.vector_store %arg6[%c0_9, %c0_10, %c0_11], %15 {strides = array<i32>} : memref<1x8x128xf32, #tpu.memory_space<vmem>>, vector<1x8x128xf32>,
    return
  }
  func.func @transform_0(%arg0: i32, %arg1: i32) -> (i32, i32, i32) {
    %c0_i32 = arith.constant 0 : i32
    %c0_i32_0 = arith.constant 0 : i32
    return %arg0, %c0_i32, %arg1 : i32, i32, i32
  }
  func.func @transform_1(%arg0: i32, %arg1: i32) -> (i32, i32, i32) {
    %c1_i32 = arith.constant 1 : i32
    %0 = arith.addi %arg1, %c1_i32 : i32
    %c1_i32_0 = arith.constant 1 : i32
    %1 = arith.muli %0, %c1_i32_0 : i32
    %c0_i32 = arith.constant 0 : i32
    %c0_i32_1 = arith.constant 0 : i32
    return %arg0, %c0_i32, %1 : i32, i32, i32
  }
  func.func @transform_2(%arg0: i32, %arg1: i32) -> (i32, i32) {
    %c0_i32 = arith.constant 0 : i32
    %c0_i32_0 = arith.constant 0 : i32
    %c0_i32_1 = arith.constant 0 : i32
    return %c0_i32, %c0_i32_0 : i32, i32
  }
  func.func @transform_3(%arg0: i32, %arg1: i32) -> (i32, i32) {
    %c0_i32 = arith.constant 0 : i32
    %c0_i32_0 = arith.constant 0 : i32
    %c0_i32_1 = arith.constant 0 : i32
    return %c0_i32, %c0_i32_0 : i32, i32
  }
  func.func @transform_4(%arg0: i32, %arg1: i32) -> (i32, i32, i32) {
    %c0_i32 = arith.constant 0 : i32
    %c0_i32_0 = arith.constant 0 : i32
    return %arg0, %c0_i32, %arg1 : i32, i32, i32
  }
}

</mosaic_0001>

<bundles_post_ra>
// kernel: tpu_custom_call.1
= control target key start
LH: loop header
LB: loop body
LE: loop exit
PB: predicated region body
PF: predicated region fallthrough
CT: control target
= control target key end

     0   :  { %9 = vsyncpa [#allocation3], 0  ;;  %s1015_s0 = inlined_call_operand.hbm [shape: f32[2,8,256], index: 0, kind: input, shape index: {}]   ;;  %s1016_s1 = inlined_call_operand.hbm [shape: f32[2,8,256], index: 1, kind: input, shape index: {}]   ;;  %s1017_s2 = inlined_call_operand.vmem [shape: f32[8,16], index: 2, kind: input, shape index: {}]   ;;  %s1018_s3 = inlined_call_operand.vmem [shape: f32[8,1], index: 3, kind: input, shape index: {}]   ;;  %s1019_s4 = inlined_call_operand.hbm [shape: f32[2,8,8], index: 4, kind: output, shape index: {}]  }
   0x1   :  { %11 = vsyncpa [#allocation3 + $0x1], 0 }
   0x2   :  { %12 = vsyncpa [#allocation6], 0 }
   0x3   :  { %14 = vsyncpa [#allocation6 + $0x1], 0 }
   0x4   :  { %15 = vsyncpa [#allocation4], 0 }
   0x5   :  { %17 = vsyncpa [#allocation4 + $0x1], 0  ;;  %s785_s15 = smov 0   ;;  %s787_s16 = smov 0  }
   0x6   :  { %s789_s17 = smov 0   ;;  %s791_s18 = smov 0  }
   0x7   :  { %s793_s19 = smov 0   ;;  %s795_s20 = smov 0  }
   0x8 LB: > { %s491_s21 = sadd.s32 4294967295, %s750_s20   ;;  %s492_s22 = sadd.s32 4294967294, %s750_s20   ;;  %s750_s20 = sphi %s795_s20, %s23_s20   ;;  %s746_s19 = sphi %s793_s19, %s1039_s19   ;;  %s742_s18 = sphi %s791_s18, %s1038_s18   ;;  %s738_s17 = sphi %s789_s17, %s1037_s17   ;;  %s734_s16 = sphi %s787_s16, %s1036_s16   ;;  %s730_s15 = sphi %s785_s15, %s1035_s15  }
   0x9   : > { %s35_s23 = sadd.s32 1, %s746_s19  ;;  %s44_s24 = sadd.s32 1, %s738_s17 }
   0xa   : > { %p37_p0 = scmp.ge.s32.totalorder %s35_s23, 2  ;;  %p51_p1 = scmp.ne.s32.totalorder %s738_s17, %s734_s16 }
   0xb   : > { %p52_p2 = scmp.eq.s32.totalorder %s750_s20, 0  ;;  %p57_p3 = scmp.ne.s32.totalorder %s734_s16, %s730_s15 }
   0xc   : > { %s1041_s23 = smov (%p37_p0, %s35_s23), 0  ;;  %p58_p5 = scmp.eq.s32.totalorder %s491_s21, 0 }
   0xd   : > { %p826_p4 = por %p52_p2, %p51_p1  ;;  %s39_s26 = ssub.s32 %s746_s19, %s1041_s23 }
   0xe   : > { %p155_p6 = scmp.eq.s32.totalorder %s491_s21, 1  ;;  %p42_p7 = scmp.eq.s32.totalorder %s39_s26, 0 }
   0xf   : > { %p832_p8 = por %p58_p5, %p57_p3  ;;  %p161_p10 = scmp.eq.s32.totalorder %s492_s22, 1 }
  0x10   : > { %p836_p9 = por %p155_p6, %p51_p1  ;;  %p542_p13 = scmp.lt.s32.totalorder %s750_s20, 2 }
  0x11   : > { %s1023_s27 = scalar_select %p832_p8, 1, 0 }
  0x12   : > { %s1024_s28 = scalar_select %p836_p9, 1, 0 }
  0x13   : > { %s841_s29 = scalar_select %p42_p7, %s738_s17, %s44_s24  }
  0x14   : > { %p843_p11 = por %p161_p10, %p57_p3  ;;  %s850_s5 = sand.u32 1, %s738_s17  }
  0x15   : > { %s495_s6 = sshll.u32 %s850_s5, 3  ;;  %s510_s7 = sshll.u32 %s746_s19, 8 }
  0x16   : > { %s1025_s30 = scalar_select %p843_p11, 1, 0 }
  0x17   : > { %s859_s10 = scalar_lea.hbm %s1015_s0, %s510_s7  ;;  %s191_s11 = scalar_lea.vmem [#allocation2], %s495_s6 }
  0x18   : > { %s200_s12 = sshll.u32 %s191_s11, 4  ;;  %p867_p0 = pnand %p542_p13, %p826_p4  ;;  %s863_s12 = int_to_ptr.vmem [resolvable:$true] %s200_s12 }
  0x19   : > { %s188_s14 = scalar_lea.sflag [#allocation3], %s850_s5  ;;  %s603_s21 = scalar_lea.hbm %s859_s10, 128 }
  0x1a   : > { %p604_p3 = scmp.ne.s32.totalorder %s859_s10, %s603_s21  ;;  %p605_p5 = pneg %p867_p0 }
  0x1b   : > { %s608_s25 = scalar_lea.hbm %s1015_s0, 512  ;;  %p609_p4 = scmp.lt.u32.totalorder %s859_s10, %s1015_s0 }
  0x1c   : > { %p606_p6 = pnand %p605_p5, %p604_p3  ;;  %p610_p10 = scmp.lt.u32.totalorder %s608_s25, %s603_s21 }
  0x1d   : > { %p612_p12 = scmp.lt.u32.totalorder %s603_s21, %s859_s10 }
  0x1e   : > { %p607_p7 = pneg %p606_p6  ;;  %p611_p13 = por %p610_p10, %p609_p4 }
  0x20   : > { %p613_p1 = por %p612_p12, %p611_p13 }
  0x22   : > { %p614_p2 = pnand %p613_p1, %p607_p7 }
  0x24   : > { %617 = shalt.err (!%p614_p2)
}
  0x25   : > { %s618_s9 = scalar_lea.vmem %s863_s12, 128  ;;  %s752_s11 = smov [#allocation2]  }
  0x26   : > { %p619_p3 = scmp.ne.s32.totalorder %s863_s12, %s618_s9  ;;  %s623_s22 = sshll.u32 %s752_s11, 4  ;;  %s624_s22 = int_to_ptr.vmem [resolvable:$false] %s623_s22 }
  0x27   : > { %s625_s24 = scalar_lea.vmem %s624_s22, 256  ;;  %p626_p9 = scmp.lt.s32.totalorder %s863_s12, %s624_s22 }
  0x28   : > { %p621_p6 = pnand %p619_p3, %p605_p5  ;;  %p627_p4 = scmp.lt.s32.totalorder %s625_s24, %s618_s9 }
  0x2a   : > { %p622_p11 = pneg %p621_p6  ;;  %p628_p10 = por %p627_p4, %p626_p9 }
  0x2c   : > { %p629_p12 = pnand %p628_p10, %p622_p11 }
  0x2e   : > { %632 = shalt.err (!%p629_p12)
}
  0x2f   : > { %534 = dma.hbm_to_vmem [thread:$0]  (!%p867_p0), %s859_s10, 128, %s863_s12, %s188_s14  }
  0x30   : > { %p1027_p1 = scmp.lt.s32.totalorder %s750_s20, 3  ;;  %p1028_p2 = scmp.ge.s32.totalorder %s750_s20, 1 }
  0x31   : > { %s424_s8 = scalar_lea.hbm %s1016_s1, %s510_s7  ;;  %s211_s9 = scalar_lea.vmem [#allocation5], %s495_s6 }
  0x32   : > { %p903_p7 = pnand %p1028_p2, %p1027_p1  ;;  %s221_s11 = sshll.u32 %s211_s9, 4  ;;  %s222_s11 = int_to_ptr.vmem [resolvable:$true] %s221_s11 }
  0x33   : > { %s914_s22 = scalar_lea.hbm %s424_s8, 128  ;;  %s208_s10 = scalar_lea.sflag [#allocation6], %s850_s5 }
  0x34   : > { %s1029_s21 = scalar_select %p903_p7, 1, 0 }
  0x35   : > { %s663_s12 = scalar_lea.hbm %s424_s8, 256  ;;  %s638_s7 = scalar_lea.hbm %s1016_s1, 512 }
  0x36   : > { %p634_p9 = scmp.ne.s32.totalorder %s914_s22, %s663_s12  ;;  %p639_p3 = scmp.lt.u32.totalorder %s914_s22, %s1016_s1 }
  0x37   : > { %p640_p6 = scmp.lt.u32.totalorder %s638_s7, %s663_s12  ;;  %p642_p10 = scmp.lt.u32.totalorder %s663_s12, %s914_s22 }
  0x38   : > { %p636_p11 = pnand %p634_p9, %p605_p5 }
  0x39   : > { %p641_p4 = por %p640_p6, %p639_p3 }
  0x3a   : > { %p637_p13 = pneg %p636_p11 }
  0x3b   : > { %p643_p12 = por %p642_p10, %p641_p4 }
  0x3d   : > { %p644_p1 = pnand %p643_p12, %p637_p13 }
  0x3f   : > { %647 = shalt.err (!%p644_p1)
}
  0x40   : > { %s648_s5 = scalar_lea.vmem %s222_s11, 128  ;;  %s753_s26 = smov [#allocation5]  }
  0x41   : > { %p649_p2 = scmp.ne.s32.totalorder %s222_s11, %s648_s5  ;;  %s653_s8 = sshll.u32 %s753_s26, 4  ;;  %s654_s8 = int_to_ptr.vmem [resolvable:$false] %s653_s8 }
  0x42   : > { %s655_s9 = scalar_lea.vmem %s654_s8, 256  ;;  %p656_p8 = scmp.lt.s32.totalorder %s222_s11, %s654_s8 }
  0x43   : > { %p651_p9 = pnand %p649_p2, %p605_p5  ;;  %p657_p7 = scmp.lt.s32.totalorder %s655_s9, %s648_s5 }
  0x45   : > { %p652_p11 = pneg %p651_p9  ;;  %p658_p3 = por %p657_p7, %p656_p8 }
  0x47   : > { %p659_p6 = pnand %p658_p3, %p652_p11 }
  0x49   : > { %662 = shalt.err (!%p659_p6)
}
  0x4a   : > { %537 = dma.hbm_to_vmem [thread:$0]  (!%p867_p0), %s914_s22, 128, %s222_s11, %s208_s10  }
  0x4b   : > { %p1030_p13 = scmp.ne.s32.totalorder %s1029_s21, 0 }
  0x4c   : > { %s938_s12 = sand.u32 (!%p1030_p13), 1, %s734_s16   ;;  %p1031_p8 = scmp.ne.s32.totalorder (!%p1030_p13), %s1023_s27, 0 }
  0x4d   : > { %230 = sbr.rel (%p1030_p13) target bundleno = 442 (0x1ba), region = 36  ;;  %s941_s14 = sshll.u32 (!%p1030_p13), %s938_s12, 3 }
  0x4e   : > { %s233_s24 = scalar_lea.sflag (!%p1030_p13), [#allocation3], %s938_s12  ;;  %s236_s7 = scalar_lea.vmem (!%p1030_p13), [#allocation2], %s941_s14 }
  0x54   : > { %717 = dma.done.wait (%p1031_p8), %s233_s24, 128  }
  0x55   : > { %719 = vsyncadd (%p1031_p8), %s233_s24, 4294967168  ;;  %s242_s13 = scalar_lea.sflag [#allocation6], %s938_s12  ;;  %s245_s21 = scalar_lea.vmem [#allocation5], %s941_s14 }
  0x56   : > { %721 = dma.done.wait (%p1031_p8), %s242_s13, 128  }
  0x57   : > { %723 = vsyncadd (%p1031_p8), %s242_s13, 4294967168  ;;  %v754_v0 = vmov 0.0|0.0   ;;  %vm755_vm0 = vmmov 0   ;;  %v756_v1 = vmov 0.0   ;;  %v757_v2 = vmov 0   ;;  %v276_v3 = vld [vmem:[%s236_s7] sm:$0xff] }
  0x58   : > { %522 = vmatprep.subr.bf16.mxu0 %v754_v0  ;;  %519 = vmatprep.mubr.msk.f32.mxu0 %vm755_vm0, %v756_v1  ;;  %v277_v4 = vld [vmem:[%s245_s21] sm:$0xff]  ;;  %s758_s11 = smov 127   ;;  %v288_v6 = vld [vmem:[%s1018_s3] sm:$0xff]  ;;  %vm284_vm1 = vcmask 1039360   ;;  %vm294_vm2 = vcmask 130048   ;;  %s507_s6 = sshll.u32 %s742_s18, 7 }
  0x59   : > { %602 = vset.pattern.permute.xlu0 %v757_v2  ;;  %v597_v5 = vpack.i.bf16 %v277_v4, %v276_v3  ;;  %v287_v12 = vld [vmem:[%s1017_s2] sm:$0xff]  ;;  %s274_s5 = scalar_lea.vmem [#allocation7], %s941_s14  ;;  %s966_s24 = scalar_lea.hbm %s1019_s4, %s507_s6 }
  0x5a   : > { %s384_s26 = sshll.u32 %s274_s5, 4  ;;  %s370_s7 = scalar_lea.sflag [#allocation4], %s938_s12  ;;  %s968_s26 = int_to_ptr.vmem [resolvable:$true] %s384_s26 }
  0x5b   : > { %598 = vrot.lane.b32.xlu0 %v597_v5, %s758_s11  ;;  %s664_s13 = scalar_lea.vmem %s968_s26, 128  ;;  %p1032_p5 = scmp.ne.s32.totalorder %s1024_s28, 0 }
  0x5c   : > { %p665_p0 = scmp.ne.s32.totalorder %s968_s26, %s664_s13  ;;  %s759_s18 = smov [#allocation7]  }
  0x5d   : > { %s668_s14 = sshll.u32 %s759_s18, 4  ;;  %s669_s14 = int_to_ptr.vmem [resolvable:$false] %s668_s14 }
  0x5e   : > { %p666_p7 = pnand %p665_p0, %p1032_p5  ;;  %s670_s21 = scalar_lea.vmem %s669_s14, 256 }
  0x5f   : > { %291 = vperm.xlu0 %602, %v288_v6   ;;  %p671_p10 = scmp.lt.s32.totalorder %s968_s26, %s669_s14  ;;  %p672_p12 = scmp.lt.s32.totalorder %s670_s21, %s664_s13 }
  0x60   : > { %p667_p4 = pneg %p666_p7 }
  0x61   : > { %p673_p1 = por %p672_p12, %p671_p10 }
  0x63   : > { %p674_p2 = pnand %p673_p1, %p667_p4 }
  0xcd   : > { %v599_v7 = vpop.permute.xlu0 %598 }
  0xce   : > { %v601_v8 = vunpack.i.h.bf16 %v599_v7  ;;  %v600_v9 = vunpack.i.l.bf16 %v599_v7 }
  0xd0   : > { %v285_v10 = vsel %vm284_vm1, %v600_v9, %v601_v8 }
  0xd1   : > { %v523_v11 = vpack.c.bf16 %v285_v10, %v276_v3 }
  0xd3   : > { %524 = vmatpush3.bf16.msra.mxu0 %v523_v11 }
  0xd6   : > { %520 = vmatmul.mubr.msk.f32.vlgmr.msra.gmra.mrb[0].mxu0 %vm294_vm2, %v287_v12 }
  0xde   : > { %v292_v13 = vpop.permute.xlu0 %291 }
 0x1a9   : > { %v364_v14 = vpop.f32.mrb[0].mxu0 }
 0x1aa   : > { %v365_v15 = vadd.f32 %v364_v14, %v292_v13  ;;  %v521_v16 = vpop.f32.mrb[1].mxu0 }
 0x1ac   : > { %368 = vst [vmem:[%s274_s5] sm:$0xff] %v365_v15 }
 0x1ad   : > { %677 = shalt.err (!%p674_p2)
}
 0x1ae   : > { %s678_s12 = scalar_lea.hbm %s966_s24, 128  ;;  %s682_s10 = scalar_lea.hbm %s1019_s4, 256 }
 0x1af   : > { %p679_p9 = scmp.ne.s32.totalorder %s966_s24, %s678_s12  ;;  %p683_p6 = scmp.lt.u32.totalorder %s966_s24, %s1019_s4 }
 0x1b0   : > { %p684_p13 = scmp.lt.u32.totalorder %s682_s10, %s678_s12  ;;  %p686_p0 = scmp.lt.u32.totalorder %s678_s12, %s966_s24 }
 0x1b1   : > { %p680_p11 = pnand %p679_p9, %p1032_p5 }
 0x1b2   : > { %p685_p8 = por %p684_p13, %p683_p6 }
 0x1b3   : > { %p681_p3 = pneg %p680_p11 }
 0x1b4   : > { %p687_p7 = por %p686_p0, %p685_p8 }
 0x1b6   : > { %p688_p4 = pnand %p687_p7, %p681_p3 }
 0x1b8   : > { %691 = shalt.err (!%p688_p4)
}
 0x1b9   : > { %529 = dma.vmem_to_hbm [thread:$0]  (%p1032_p5), %s968_s26, 128, %s966_s24, %s370_s7  }
 0x1ba PF: > { %s396_s6 = sand.u32 1, %s730_s15   ;;  %p1033_p10 = scmp.ne.s32.totalorder %s1025_s30, 0 }
 0x1bb   : > { %p1034_p12 = scmp.ge.s32.totalorder %s750_s20, 2  ;;  %s397_s5 = scalar_lea.sflag [#allocation4], %s396_s6 }
 0x1bd   : > { %p539_p1 = pnand %p1034_p12, %p1033_p10 }
 0x1bf   : > { %725 = dma.done.wait (!%p539_p1), %s397_s5, 128  }
 0x1c0   : > { %727 = vsyncadd (!%p539_p1), %s397_s5, 4294967168  ;;  %s23_s20 = sadd.s32 1, %s750_s20   ;;  %s1035_s15 = smov %s734_s16 }
 0x1c1   : > { %p20_p2 = scmp.ge.s32.totalorder %s23_s20, 4   ;;  %s1036_s16 = smov %s738_s17 }
 0x1c2   : > { %s1037_s17 = smov %s841_s29  ;;  %s1038_s18 = smov %s746_s19 }
 0x1c3   : > { %s1039_s19 = smov %s1041_s23  ;;  %22 = sbr.rel (!%p20_p2) target bundleno = 8 (0x8), region = 94 }
 0x1ca   :  { %402 = vsyncpa [#allocation3], 1 }
 0x1cb   :  { %404 = vsyncpa [#allocation3 + $0x1], 1 }
 0x1cc   :  { %405 = vsyncpa [#allocation6], 1 }
 0x1cd   :  { %407 = vsyncpa [#allocation6 + $0x1], 1 }
 0x1ce   :  { %408 = vsyncpa [#allocation4], 1 }
 0x1cf   :  { %410 = vsyncpa [#allocation4 + $0x1], 1 }

</bundles_post_ra>
